<compile_context>
chip_gen: v7x
topology: tpu7x:2x2x1
jax: 0.10.0
libtpu: 0.0.40
codegen_flags: <defaults>
</compile_context>

<pallas_src>
import functools

import jax
import jax.numpy as jnp
import numpy as np
from jax.experimental import pallas as pl
from jax.experimental.pallas import tpu as pltpu


def _attn_kernel(q_ref, kv_ref, wq_ref, wk_ref, wv_ref, bv_ref, o_ref, *,
                 n_samples, n_heads):
    # q_ref : (1, C+1, Dp) bf16 -- ones row appended so bq folds into the matmul
    # kv_ref: (1, C, S*Dp) bf16 -- samples folded into the lane dim
    # wq_ref: (OC, C+1)    bf16 -- softmax scale and bq folded in
    # wk_ref: (OC, C)      bf16
    # wv_ref: (OC, C)      bf16
    # bv_ref: (OC, 1)      f32
    # o_ref : (1, OC, Dp)  f32
    OC = o_ref.shape[1]
    D = o_ref.shape[2]
    S = n_samples
    H = n_heads
    HC = OC // H

    q = q_ref[0]                                   # (C+1, Dp) bf16
    kv = kv_ref[0]                                 # (C, S*Dp) bf16
    wk = wk_ref[...]
    wv = wv_ref[...]

    # q projection: one MXU matmul (scale + bias already folded into weights).
    qp = jnp.dot(wq_ref[...], q, preferred_element_type=jnp.float32)  # (OC, Dp)

    # ---- pass 1: per-sample k projection + logits -------------------------
    # Per-sample slices are static, 128-aligned lane slices. The k bias is
    # omitted: constant across samples at a fixed (head, position) and softmax
    # over samples is shift-invariant, so it cancels exactly.
    lgs = []
    for s in range(S):
        kp = jnp.dot(wk, kv[:, s * D:(s + 1) * D],
                     preferred_element_type=jnp.float32)              # (OC, Dp)
        lgs.append((qp * kp).reshape(H, HC, D).sum(axis=1))           # (H, Dp)

    # Softmax over samples (max-subtracted); VPU/EUP only, f32, no cross-lane.
    m = lgs[0]
    for s in range(1, S):
        m = jnp.maximum(m, lgs[s])
    es = [jnp.exp(l - m) for l in lgs]
    denom = es[0]
    for s in range(1, S):
        denom = denom + es[s]
    inv = pl.reciprocal(denom, approx=True)                           # (H, Dp) EUP

    # ---- pass 2: per-sample v projection + weighted accumulation ----------
    acc = None
    for s in range(S):
        vp = jnp.dot(wv, kv[:, s * D:(s + 1) * D],
                     preferred_element_type=jnp.float32)              # (OC, Dp)
        w_s = es[s] * inv                                             # (H, Dp)
        w_b = jnp.broadcast_to(w_s[:, None, :], (H, HC, D)).reshape(OC, D)
        term = w_b * vp
        acc = term if acc is None else acc + term
    # v bias: softmax weights sum to 1, so sum_s w_s * bv == bv -> add once.
    acc = acc + bv_ref[...]
    o_ref[0] = acc.astype(o_ref.dtype)


def attn_forward(q, kv, params, *, n_samples, n_heads,
                 operand_dtype=jnp.bfloat16):
    """q: (B, C, FH, FW) float32;  kv: (B, C, S, FH*FW) float32."""
    B, C, FH, FW = q.shape
    D = FH * FW
    S = n_samples
    OC = params["wq"].shape[0]
    assert kv.shape == (B, C, S, D)
    assert OC % n_heads == 0
    HC = OC // n_heads
    scale = float(HC) ** (-0.5)

    # Pad the spatial (lane) dim to a 128-multiple so stores stay unmasked and
    # vregs dense (no-op for 16x16).
    # TODO(synk): at realistic sizes keep D a 128-multiple upstream (or fuse
    # the pad into the producer) -- this jnp.pad is an extra HBM pass over kv.
    Dp = ((D + 127) // 128) * 128
    q_r = q.reshape(B, C, D)
    kv_r = kv
    if Dp != D:
        q_r = jnp.pad(q_r, ((0, 0), (0, 0), (0, Dp - D)))
        kv_r = jnp.pad(kv_r, ((0, 0), (0, 0), (0, 0), (0, Dp - D)))

    # Ones row along channels so the q bias folds into the matmul (q is small).
    q_aug = jnp.concatenate(
        [q_r, jnp.ones((B, 1, Dp), q_r.dtype)], axis=1).astype(operand_dtype)
    # Contiguous reshape only -- no HBM transpose of the largest tensor; the
    # bf16 cast halves its HBM->VMEM DMA bytes.
    kv_flat = kv_r.reshape(B, C, S * Dp).astype(operand_dtype)

    # Softmax scale and bq folded into the q-projection weights.
    wq_aug = (jnp.concatenate([params["wq"], params["bq"][:, None]], axis=1)
              * scale).astype(operand_dtype)                      # (OC, C+1)
    wk = params["wk"].astype(operand_dtype)                       # (OC, C)
    wv = params["wv"].astype(operand_dtype)                       # (OC, C)
    bv = params["bv"].reshape(OC, 1).astype(jnp.float32)          # (OC, 1)

    kernel = functools.partial(_attn_kernel, n_samples=S, n_heads=n_heads)
    full2d = lambda b: (0, 0)

    # grid=(B,) marked "parallel": B=2 feeds both v7x TensorCores.
    # TODO(synk): for realistic feature maps (large C, D) add a lane (D) grid
    # axis with 512-2048-lane tiles (also covers B=1 megacore sharding) and
    # re-derive vmem_limit_bytes so double-buffered kv blocks fit v7x's
    # 64 MiB VMEM; unnecessary at these small shapes.
    out = pl.pallas_call(
        kernel,
        out_shape=jax.ShapeDtypeStruct((B, OC, Dp), jnp.float32),
        grid=(B,),
        in_specs=[
            pl.BlockSpec((1, C + 1, Dp), lambda b: (b, 0, 0)),
            pl.BlockSpec((1, C, S * Dp), lambda b: (b, 0, 0)),
            pl.BlockSpec((OC, C + 1), full2d),
            pl.BlockSpec((OC, C), full2d),
            pl.BlockSpec((OC, C), full2d),
            pl.BlockSpec((OC, 1), full2d),
        ],
        out_specs=pl.BlockSpec((1, OC, Dp), lambda b: (b, 0, 0)),
        compiler_params=pltpu.CompilerParams(
            dimension_semantics=("parallel",),
            vmem_limit_bytes=32 * 1024 * 1024),
    )(q_aug, kv_flat, wq_aug, wk, wv, bv)

    if Dp != D:
        out = out[:, :, :D]
    return out.reshape(B, OC, FH, FW)


def attn_reference(q, kv, params, *, n_samples, n_heads):
    """Pure-JAX (float32) mirror of the PyTorch forward, for validation."""
    B, C, FH, FW = q.shape
    D = FH * FW
    OC = params["wq"].shape[0]
    HC = OC // n_heads
    scale = float(HC) ** (-0.5)

    qp = jnp.einsum("oc,bcd->bod", params["wq"], q.reshape(B, C, D)) \
        + params["bq"][None, :, None]
    kp = jnp.einsum("oc,bcsd->bosd", params["wk"], kv) \
        + params["bk"][None, :, None, None]
    vp = jnp.einsum("oc,bcsd->bosd", params["wv"], kv) \
        + params["bv"][None, :, None, None]

    qh = qp.reshape(B * n_heads, HC, D)
    kh = kp.reshape(B * n_heads, HC, n_samples, D)
    vh = vp.reshape(B * n_heads, HC, n_samples, D)

    attn = jnp.einsum("bcd,bcsd->bsd", qh, kh) * scale
    attn = jax.nn.softmax(attn, axis=1)
    out = jnp.einsum("bsd,bcsd->bcd", attn, vh)
    return out.reshape(B, OC, FH, FW)


if __name__ == "__main__":
    # Small, deterministic configuration.
    B, IN_C, OUT_C = 2, 4, 32
    N_SAMPLES, N_HEADS = 4, 4
    FH = FW = 16
    D = FH * FW

    key = jax.random.PRNGKey(0)
    ks = jax.random.split(key, 8)
    params = {
        "wq": jax.random.normal(ks[0], (OUT_C, IN_C), jnp.float32) * 0.1,
        "bq": jax.random.normal(ks[1], (OUT_C,), jnp.float32) * 0.1,
        "wk": jax.random.normal(ks[2], (OUT_C, IN_C), jnp.float32) * 0.1,
        "bk": jax.random.normal(ks[3], (OUT_C,), jnp.float32) * 0.1,
        "wv": jax.random.normal(ks[4], (OUT_C, IN_C), jnp.float32) * 0.1,
        "bv": jax.random.normal(ks[5], (OUT_C,), jnp.float32) * 0.1,
    }
    q = jax.random.normal(ks[6], (B, IN_C, FH, FW), jnp.float32)
    kv = jax.random.normal(ks[7], (B, IN_C, N_SAMPLES, D), jnp.float32)

    out = attn_forward(q, kv, params, n_samples=N_SAMPLES, n_heads=N_HEADS)
    out = jax.block_until_ready(out)

    ref = attn_reference(q, kv, params, n_samples=N_SAMPLES, n_heads=N_HEADS)
    ref = jax.block_until_ready(ref)

    assert out.shape == (B, OUT_C, FH, FW)
    # Tolerance accounts for bfloat16 MXU operands (f32 accumulation) and the
    # EUP approximate reciprocal in the softmax denominator.
    np.testing.assert_allclose(np.asarray(out), np.asarray(ref),
                               rtol=1e-2, atol=1e-2)
    print("KERNEL_OK")
</pallas_src>

<mosaic_0001>
module attributes {stable_mosaic.version = 11 : i64} {
  func.func @_attn_kernel(%arg0: i32, %arg1: memref<1x5x256xbf16, #tpu.memory_space<vmem>>, %arg2: memref<1x4x1024xbf16, #tpu.memory_space<vmem>>, %arg3: memref<32x5xbf16, #tpu.memory_space<vmem>>, %arg4: memref<32x4xbf16, #tpu.memory_space<vmem>>, %arg5: memref<32x4xbf16, #tpu.memory_space<vmem>>, %arg6: memref<32x1xf32, #tpu.memory_space<vmem>>, %arg7: memref<1x32x256xf32, #tpu.memory_space<vmem>>) attributes {dimension_semantics = [#tpu.dimension_semantics<parallel>], iteration_bounds = array<i64: 2>, scalar_prefetch = 0 : i64, scratch_operands = 0 : i64, tpu.core_type = #tpu.core_type<tc>, window_params = [{transform_indices = @transform_0, window_bounds = array<i64: 1, 5, 256>}, {transform_indices = @transform_1, window_bounds = array<i64: 1, 4, 1024>}, {pipeline_mode = #tpu.pipeline_mode<synchronous>, transform_indices = @transform_2, window_bounds = array<i64: 32, 5>}, {pipeline_mode = #tpu.pipeline_mode<synchronous>, transform_indices = @transform_3, window_bounds = array<i64: 32, 4>}, {pipeline_mode = #tpu.pipeline_mode<synchronous>, transform_indices = @transform_4, window_bounds = array<i64: 32, 4>}, {pipeline_mode = #tpu.pipeline_mode<synchronous>, transform_indices = @transform_5, window_bounds = array<i64: 32, 1>}, {transform_indices = @transform_6, window_bounds = array<i64: 1, 32, 256>}]} {
    %c0 = arith.constant 0 : index
    %c0_0 = arith.constant 0 : index
    %c0_1 = arith.constant 0 : index
    %0 = vector.load %arg1[%c0, %c0_0, %c0_1] : memref<1x5x256xbf16, #tpu.memory_space<vmem>>, vector<1x5x256xbf16>
    %1 = vector.shape_cast %0 : vector<1x5x256xbf16> to vector<5x256xbf16>
    %c0_2 = arith.constant 0 : index
    %c0_3 = arith.constant 0 : index
    %c0_4 = arith.constant 0 : index
    %2 = vector.load %arg2[%c0_2, %c0_3, %c0_4] : memref<1x4x1024xbf16, #tpu.memory_space<vmem>>, vector<1x4x1024xbf16>
    %3 = vector.shape_cast %2 : vector<1x4x1024xbf16> to vector<4x1024xbf16>
    %c0_5 = arith.constant 0 : index
    %c0_6 = arith.constant 0 : index
    %4 = vector.load %arg4[%c0_5, %c0_6] : memref<32x4xbf16, #tpu.memory_space<vmem>>, vector<32x4xbf16>
    %c0_7 = arith.constant 0 : index
    %c0_8 = arith.constant 0 : index
    %5 = vector.load %arg5[%c0_7, %c0_8] : memref<32x4xbf16, #tpu.memory_space<vmem>>, vector<32x4xbf16>
    %c0_9 = arith.constant 0 : index
    %c0_10 = arith.constant 0 : index
    %6 = vector.load %arg3[%c0_9, %c0_10] : memref<32x5xbf16, #tpu.memory_space<vmem>>, vector<32x5xbf16>
    %cst = arith.constant dense<0.000000e+00> : vector<32x256xf32>
    %7 = tpu.matmul %6, %1, %cst {dimension_numbers = #tpu.dot_dimension_numbers<[1], [0], [0], [1], [0, 0, 1, 1], [], []>} : vector<32x5xbf16>, vector<5x256xbf16>, vector<32x256xf32> -> vector<32x256xf32>
    %8 = vector.extract_strided_slice %3 {offsets = [0, 0], sizes = [4, 256], strides = [1, 1]} : vector<4x1024xbf16> to vector<4x256xbf16>
    %cst_11 = arith.constant dense<0.000000e+00> : vector<32x256xf32>
    %9 = tpu.matmul %4, %8, %cst_11 {dimension_numbers = #tpu.dot_dimension_numbers<[1], [0], [0], [1], [0, 0, 1, 1], [], []>} : vector<32x4xbf16>, vector<4x256xbf16>, vector<32x256xf32> -> vector<32x256xf32>
    %10 = arith.mulf %7, %9 : vector<32x256xf32>
    %11 = vector.shape_cast %10 : vector<32x256xf32> to vector<4x8x256xf32>
    %cst_12 = arith.constant dense<0.000000e+00> : vector<4x256xf32>
    %12 = vector.multi_reduction <add>, %11, %cst_12 [1] : vector<4x8x256xf32> to vector<4x256xf32>
    %13 = vector.extract_strided_slice %3 {offsets = [0, 256], sizes = [4, 256], strides = [1, 1]} : vector<4x1024xbf16> to vector<4x256xbf16>
    %cst_13 = arith.constant dense<0.000000e+00> : vector<32x256xf32>
    %14 = tpu.matmul %4, %13, %cst_13 {dimension_numbers = #tpu.dot_dimension_numbers<[1], [0], [0], [1], [0, 0, 1, 1], [], []>} : vector<32x4xbf16>, vector<4x256xbf16>, vector<32x256xf32> -> vector<32x256xf32>
    %15 = arith.mulf %7, %14 : vector<32x256xf32>
    %16 = vector.shape_cast %15 : vector<32x256xf32> to vector<4x8x256xf32>
    %cst_14 = arith.constant dense<0.000000e+00> : vector<4x256xf32>
    %17 = vector.multi_reduction <add>, %16, %cst_14 [1] : vector<4x8x256xf32> to vector<4x256xf32>
    %18 = vector.extract_strided_slice %3 {offsets = [0, 512], sizes = [4, 256], strides = [1, 1]} : vector<4x1024xbf16> to vector<4x256xbf16>
    %cst_15 = arith.constant dense<0.000000e+00> : vector<32x256xf32>
    %19 = tpu.matmul %4, %18, %cst_15 {dimension_numbers = #tpu.dot_dimension_numbers<[1], [0], [0], [1], [0, 0, 1, 1], [], []>} : vector<32x4xbf16>, vector<4x256xbf16>, vector<32x256xf32> -> vector<32x256xf32>
    %20 = arith.mulf %7, %19 : vector<32x256xf32>
    %21 = vector.shape_cast %20 : vector<32x256xf32> to vector<4x8x256xf32>
    %cst_16 = arith.constant dense<0.000000e+00> : vector<4x256xf32>
    %22 = vector.multi_reduction <add>, %21, %cst_16 [1] : vector<4x8x256xf32> to vector<4x256xf32>
    %23 = vector.extract_strided_slice %3 {offsets = [0, 768], sizes = [4, 256], strides = [1, 1]} : vector<4x1024xbf16> to vector<4x256xbf16>
    %cst_17 = arith.constant dense<0.000000e+00> : vector<32x256xf32>
    %24 = tpu.matmul %4, %23, %cst_17 {dimension_numbers = #tpu.dot_dimension_numbers<[1], [0], [0], [1], [0, 0, 1, 1], [], []>} : vector<32x4xbf16>, vector<4x256xbf16>, vector<32x256xf32> -> vector<32x256xf32>
    %25 = arith.mulf %7, %24 : vector<32x256xf32>
    %26 = vector.shape_cast %25 : vector<32x256xf32> to vector<4x8x256xf32>
    %cst_18 = arith.constant dense<0.000000e+00> : vector<4x256xf32>
    %27 = vector.multi_reduction <add>, %26, %cst_18 [1] : vector<4x8x256xf32> to vector<4x256xf32>
    %28 = arith.maximumf %12, %17 : vector<4x256xf32>
    %29 = arith.maximumf %28, %22 : vector<4x256xf32>
    %30 = arith.maximumf %29, %27 : vector<4x256xf32>
    %31 = arith.subf %12, %30 : vector<4x256xf32>
    %32 = math.exp %31 : vector<4x256xf32>
    %33 = arith.subf %17, %30 : vector<4x256xf32>
    %34 = math.exp %33 : vector<4x256xf32>
    %35 = arith.subf %22, %30 : vector<4x256xf32>
    %36 = math.exp %35 : vector<4x256xf32>
    %37 = arith.subf %27, %30 : vector<4x256xf32>
    %38 = math.exp %37 : vector<4x256xf32>
    %39 = arith.addf %32, %34 : vector<4x256xf32>
    %40 = arith.addf %39, %36 : vector<4x256xf32>
    %41 = arith.addf %40, %38 : vector<4x256xf32>
    %42 = tpu.reciprocal %41 {approx = true} : vector<4x256xf32> -> vector<4x256xf32>
    %43 = vector.extract_strided_slice %3 {offsets = [0, 0], sizes = [4, 256], strides = [1, 1]} : vector<4x1024xbf16> to vector<4x256xbf16>
    %cst_19 = arith.constant dense<0.000000e+00> : vector<32x256xf32>
    %44 = tpu.matmul %5, %43, %cst_19 {dimension_numbers = #tpu.dot_dimension_numbers<[1], [0], [0], [1], [0, 0, 1, 1], [], []>} : vector<32x4xbf16>, vector<4x256xbf16>, vector<32x256xf32> -> vector<32x256xf32>
    %45 = arith.mulf %32, %42 : vector<4x256xf32>
    %46 = vector.shape_cast %45 : vector<4x256xf32> to vector<4x1x256xf32>
    %47 = vector.shape_cast %46 : vector<4x1x256xf32> to vector<4x1x256xf32>
    %48 = vector.broadcast %47 : vector<4x1x256xf32> to vector<4x8x256xf32>
    %49 = vector.shape_cast %48 : vector<4x8x256xf32> to vector<32x256xf32>
    %50 = arith.mulf %49, %44 : vector<32x256xf32>
    %51 = vector.extract_strided_slice %3 {offsets = [0, 256], sizes = [4, 256], strides = [1, 1]} : vector<4x1024xbf16> to vector<4x256xbf16>
    %cst_20 = arith.constant dense<0.000000e+00> : vector<32x256xf32>
    %52 = tpu.matmul %5, %51, %cst_20 {dimension_numbers = #tpu.dot_dimension_numbers<[1], [0], [0], [1], [0, 0, 1, 1], [], []>} : vector<32x4xbf16>, vector<4x256xbf16>, vector<32x256xf32> -> vector<32x256xf32>
    %53 = arith.mulf %34, %42 : vector<4x256xf32>
    %54 = vector.shape_cast %53 : vector<4x256xf32> to vector<4x1x256xf32>
    %55 = vector.shape_cast %54 : vector<4x1x256xf32> to vector<4x1x256xf32>
    %56 = vector.broadcast %55 : vector<4x1x256xf32> to vector<4x8x256xf32>
    %57 = vector.shape_cast %56 : vector<4x8x256xf32> to vector<32x256xf32>
    %58 = arith.mulf %57, %52 : vector<32x256xf32>
    %59 = arith.addf %50, %58 : vector<32x256xf32>
    %60 = vector.extract_strided_slice %3 {offsets = [0, 512], sizes = [4, 256], strides = [1, 1]} : vector<4x1024xbf16> to vector<4x256xbf16>
    %cst_21 = arith.constant dense<0.000000e+00> : vector<32x256xf32>
    %61 = tpu.matmul %5, %60, %cst_21 {dimension_numbers = #tpu.dot_dimension_numbers<[1], [0], [0], [1], [0, 0, 1, 1], [], []>} : vector<32x4xbf16>, vector<4x256xbf16>, vector<32x256xf32> -> vector<32x256xf32>
    %62 = arith.mulf %36, %42 : vector<4x256xf32>
    %63 = vector.shape_cast %62 : vector<4x256xf32> to vector<4x1x256xf32>
    %64 = vector.shape_cast %63 : vector<4x1x256xf32> to vector<4x1x256xf32>
    %65 = vector.broadcast %64 : vector<4x1x256xf32> to vector<4x8x256xf32>
    %66 = vector.shape_cast %65 : vector<4x8x256xf32> to vector<32x256xf32>
    %67 = arith.mulf %66, %61 : vector<32x256xf32>
    %68 = arith.addf %59, %67 : vector<32x256xf32>
    %69 = vector.extract_strided_slice %3 {offsets = [0, 768], sizes = [4, 256], strides = [1, 1]} : vector<4x1024xbf16> to vector<4x256xbf16>
    %cst_22 = arith.constant dense<0.000000e+00> : vector<32x256xf32>
    %70 = tpu.matmul %5, %69, %cst_22 {dimension_numbers = #tpu.dot_dimension_numbers<[1], [0], [0], [1], [0, 0, 1, 1], [], []>} : vector<32x4xbf16>, vector<4x256xbf16>, vector<32x256xf32> -> vector<32x256xf32>
    %71 = arith.mulf %38, %42 : vector<4x256xf32>
    %72 = vector.shape_cast %71 : vector<4x256xf32> to vector<4x1x256xf32>
    %73 = vector.shape_cast %72 : vector<4x1x256xf32> to vector<4x1x256xf32>
    %74 = vector.broadcast %73 : vector<4x1x256xf32> to vector<4x8x256xf32>
    %75 = vector.shape_cast %74 : vector<4x8x256xf32> to vector<32x256xf32>
    %76 = arith.mulf %75, %70 : vector<32x256xf32>
    %77 = arith.addf %68, %76 : vector<32x256xf32>
    %c0_23 = arith.constant 0 : index
    %c0_24 = arith.constant 0 : index
    %78 = vector.load %arg6[%c0_23, %c0_24] : memref<32x1xf32, #tpu.memory_space<vmem>>, vector<32x1xf32>
    %79 = vector.broadcast %78 : vector<32x1xf32> to vector<32x256xf32>
    %80 = arith.addf %77, %79 : vector<32x256xf32>
    %c0_25 = arith.constant 0 : index
    %c0_26 = arith.constant 0 : index
    %c0_27 = arith.constant 0 : index
    %81 = vector.load %arg7[%c0_25, %c0_26, %c0_27] : memref<1x32x256xf32, #tpu.memory_space<vmem>>, vector<1x32x256xf32>
    %82 = vector.shape_cast %81 : vector<1x32x256xf32> to vector<32x256xf32>
    %83 = vector.shape_cast %80 : vector<32x256xf32> to vector<1x32x256xf32>
    tpu.vector_store %arg7[%c0_25, %c0_26, %c0_27], %83 {strides = array<i32>} : memref<1x32x256xf32, #tpu.memory_space<vmem>>, vector<1x32x256xf32>,
    return
  }
  func.func @transform_0(%arg0: i32) -> (i32, i32, i32) {
    %c0_i32 = arith.constant 0 : i32
    %c0_i32_0 = arith.constant 0 : i32
    %c0_i32_1 = arith.constant 0 : i32
    return %arg0, %c0_i32, %c0_i32_0 : i32, i32, i32
  }
  func.func @transform_1(%arg0: i32) -> (i32, i32, i32) {
    %c0_i32 = arith.constant 0 : i32
    %c0_i32_0 = arith.constant 0 : i32
    %c0_i32_1 = arith.constant 0 : i32
    return %arg0, %c0_i32, %c0_i32_0 : i32, i32, i32
  }
  func.func @transform_2(%arg0: i32) -> (i32, i32) {
    %c0_i32 = arith.constant 0 : i32
    %c0_i32_0 = arith.constant 0 : i32
    %c0_i32_1 = arith.constant 0 : i32
    return %c0_i32, %c0_i32_0 : i32, i32
  }
  func.func @transform_3(%arg0: i32) -> (i32, i32) {
    %c0_i32 = arith.constant 0 : i32
    %c0_i32_0 = arith.constant 0 : i32
    %c0_i32_1 = arith.constant 0 : i32
    return %c0_i32, %c0_i32_0 : i32, i32
  }
  func.func @transform_4(%arg0: i32) -> (i32, i32) {
    %c0_i32 = arith.constant 0 : i32
    %c0_i32_0 = arith.constant 0 : i32
    %c0_i32_1 = arith.constant 0 : i32
    return %c0_i32, %c0_i32_0 : i32, i32
  }
  func.func @transform_5(%arg0: i32) -> (i32, i32) {
    %c0_i32 = arith.constant 0 : i32
    %c0_i32_0 = arith.constant 0 : i32
    %c0_i32_1 = arith.constant 0 : i32
    return %c0_i32, %c0_i32_0 : i32, i32
  }
  func.func @transform_6(%arg0: i32) -> (i32, i32, i32) {
    %c0_i32 = arith.constant 0 : i32
    %c0_i32_0 = arith.constant 0 : i32
    %c0_i32_1 = arith.constant 0 : i32
    return %arg0, %c0_i32, %c0_i32_0 : i32, i32, i32
  }
}

</mosaic_0001>

<bundles_post_ra>
// kernel: tpu_custom_call.1
= control target key start
LH: loop header
LB: loop body
LE: loop exit
PB: predicated region body
PF: predicated region fallthrough
CT: control target
= control target key end

     0   :  { %11 = vsyncpa [#allocation3], 0  ;;  %s2406_s0 = inlined_call_operand.vmem [shape: bf16[2,5,256], index: 0, kind: input, shape index: {}]   ;;  %s2407_s1 = inlined_call_operand.vmem [shape: bf16[2,4,1024], index: 1, kind: input, shape index: {}]   ;;  %s2408_s2 = inlined_call_operand.vmem [shape: bf16[32,5], index: 2, kind: input, shape index: {}]   ;;  %s2409_s3 = inlined_call_operand.vmem [shape: bf16[32,4], index: 3, kind: input, shape index: {}]   ;;  %s2410_s4 = inlined_call_operand.vmem [shape: bf16[32,4], index: 4, kind: input, shape index: {}]   ;;  %s2411_s5 = inlined_call_operand.vmem [shape: f32[32,1], index: 5, kind: input, shape index: {}]   ;;  %s2412_s6 = inlined_call_operand.hbm [shape: f32[2,32,256], index: 6, kind: output, shape index: {}]  }
   0x1   :  { %13 = vsyncpa [#allocation3 + $0x1], 0  ;;  %s1774_s21 = smov 0   ;;  %s1776_s22 = smov 0  }
   0x2   :  { %s1778_s23 = smov 0   ;;  %s1780_s24 = smov 0  }
   0x3 LB: > { %s1795_s25 = sadd.s32 4294967295, %s1731_s24   ;;  %s1480_s26 = sadd.s32 4294967294, %s1731_s24   ;;  %s1731_s24 = sphi %s1780_s24, %s2466_s24   ;;  %s1727_s23 = sphi %s1778_s23, %s2465_s23   ;;  %s1723_s22 = sphi %s1776_s22, %s2464_s22   ;;  %s1719_s21 = sphi %s1774_s21, %s2463_s21  }
   0x4   : > { %s1799_s27 = sadd.s32 1, %s1731_s24   ;;  %s162_s28 = sadd.s32 1, %s1727_s23 }
   0x5   : > { %s159_s29 = ssub.s32 %s1731_s24, %s1799_s27  ;;  %p172_p0 = scmp.ne.s32.totalorder %s1727_s23, %s1723_s22 }
   0x6   : > { %p160_p1 = scmp.eq.s32.totalorder %s159_s29, 0  ;;  %p173_p2 = scmp.eq.s32.totalorder %s1795_s25, 1 }
   0x7   : > { %p178_p3 = scmp.ne.s32.totalorder %s1723_s22, %s1719_s21  ;;  %p179_p4 = scmp.eq.s32.totalorder %s1480_s26, 1 }
   0x8   : > { %s1810_s30 = scalar_select %p160_p1, %s1727_s23, %s162_s28  }
   0x9   : > { %p1812_p5 = por %p173_p2, %p172_p0  ;;  %p1816_p6 = por %p179_p4, %p178_p3 }
   0xa   : > { %p1483_p7 = scmp.ge.s32.totalorder %s1731_s24, 1  ;;  %p225_p8 = scmp.lt.s32.totalorder %s1731_s24, 3 }
   0xc   : > { %p226_p9 = pnand %p1483_p7, %p225_p8 }
   0xe   : > { %229 = sbr.rel (%p226_p9) target bundleno = 408 (0x198), region = 44 }
  0x15   : > { %p260_p10 = scmp.lt.s32.totalorder %s1795_s25, 1  ;;  %vm308_vm0 = vcmask 1041408   ;;  %v1733_v0 = vmov 0   ;;  %v385_v1 = vlaneseq  ;;  %vm309_vm1 = vcmask 1042432   ;;  %v1352_v19 = vld [vmem:[%s2411_s5] sm:$0xff]  ;;  %v1354_v24 = vld [vmem:[%s2411_s5 + $0x10] sm:$0xff] }
  0x16   : > { %350 = vmatprep.mubr.bf16.mxu0 %v1733_v0  ;;  %360 = vmatprep.mubr.bf16.mxu1 %v1733_v0  ;;  %v1734_v2 = vmov 65535   ;;  %v1735_v4 = vmov 1983009808   ;;  %v1583_v25 = vld [vmem:[%s2408_s2] sm:$0xff]   ;;  %v1584_v26 = vld [vmem:[%s2408_s2 + $0x8] sm:$0xff]   ;;  %vm301_vm2 = vcmask 39936  }
  0x17   : > { %s261_s9 = scalar_select %p260_p10, %s1795_s25, 1  ;;  %1577 = vset.pattern.permute.xlu0 %v1733_v0  ;;  %1578 = vset.pattern.permute.xlu1 %v1733_v0  ;;  %v310_v3 = vsel %vm308_vm0, 4294967295, %v1734_v2  ;;  %v383_v5 = vunpack.c.l.s4 %v1735_v4  ;;  %v386_v6 = vshrl.u32 %v385_v1, 7  ;;  %v1353_v33 = vld [vmem:[%s2411_s5 + $0x8] sm:$0xff]  ;;  %v1355_v34 = vld [vmem:[%s2411_s5 + $0x18] sm:$0xff]  ;;  %v1585_v35 = vld [vmem:[%s2409_s3] sm:$0xff]  }
  0x18   : > { %v311_v10 = vsel %vm309_vm1, %v310_v3, 0  ;;  %1358 = vperm.xlu0 %1577, %v1352_v19   ;;  %1368 = vperm.xlu1 %1578, %v1354_v24   ;;  %vm390_vm3 = vcmask 31744   ;;  %v1586_v38 = vld [vmem:[%s2409_s3 + $0x8] sm:$0xff]   ;;  %v1587_v39 = vld [vmem:[%s2410_s4] sm:$0xff]   ;;  %s257_s29 = sand.u32 1, %s1723_s22  }
  0x19   : > { %s1528_s10 = sshll.u32 %s261_s9, 3  ;;  %s1529_s11 = sshll.u32 %s261_s9, 4  ;;  %v384_v11 = vunpack.c.0.s8 %v383_v5  ;;  %v1588_v40 = vld [vmem:[%s2410_s4 + $0x8] sm:$0xff]  }
  0x1a   : > { %s264_s14 = scalar_lea.vmem %s2406_s0, %s1528_s10  ;;  %s269_s17 = scalar_lea.vmem %s2407_s1, %s1529_s11 }
  0x1b   : > { %v271_v7 = vld [vmem:[%s264_s14] sm:$0x77]  ;;  %v273_v9 = vld [vmem:[%s269_s17 + $0x8] sm:$0xff]  ;;  %v387_v16 = vsub.s32 %v384_v11, %v386_v6  ;;  %s1484_s9 = sshll.u32 %s257_s29, 6  ;;  %s1530_s11 = sshll.u32 %s1795_s25, 10 }
  0x1c   : > { %v272_v8 = vld [vmem:[%s269_s17] sm:$0xff]  ;;  %v1492_v12 = vcombine.high %v271_v7, %v271_v7  ;;  %v760_v14 = vcombine.high %v273_v9, %v273_v9  ;;  %v1491_v15 = vcombine.low %v271_v7, %v271_v7  ;;  %1363 = vperm.xlu0 %1577, %v1353_v33   ;;  %1373 = vperm.xlu1 %1578, %v1355_v34   ;;  %s2328_s10 = scalar_lea.vmem [#allocation2], %s1484_s9  ;;  %s2358_s15 = scalar_lea.hbm %s2412_s6, %s1530_s11 }
  0x1d   : > { %v512_v13 = vcombine.high %v272_v8, %v272_v8  ;;  %v388_v20 = vrot.slane %v272_v8, %v387_v16  ;;  %v643_v22 = vrot.slane %v273_v9, %v387_v16  ;;  %s1406_s12 = sshll.u32 %s2328_s10, 4  ;;  %s2365_s25 = scalar_lea.sflag [#allocation3], %s257_s29  ;;  %s2360_s12 = int_to_ptr.vmem [resolvable:$true] %s1406_s12 }
  0x1e   : > { %v316_v17 = vand.u32 %v1492_v12, %v311_v10  ;;  %v313_v18 = vand.u32 %v1491_v15, %v311_v10  ;;  %v767_v23 = vrot.slane %v760_v14, %v387_v16  ;;  %s1669_s16 = scalar_lea.vmem %s2360_s12, 1024  ;;  %s1736_s17 = smov [#allocation2]  }
  0x1f   : > { %v519_v21 = vrot.slane %v512_v13, %v387_v16  ;;  %v389_v27 = vcombine.high %v388_v20, %v388_v20  ;;  %v398_v29 = vsel %vm308_vm0, %v388_v20, 0  ;;  %v644_v31 = vcombine.high %v643_v22, %v643_v22  ;;  %p1670_p11 = scmp.ne.s32.totalorder %s2360_s12, %s1669_s16  ;;  %s1673_s18 = sshll.u32 %s1736_s17, 4  ;;  %s1674_s18 = int_to_ptr.vmem [resolvable:$false] %s1673_s18 }
  0x20   : > { %318 = vmatprep.subr.bf16.mxu0 %v316_v17  ;;  %1531 = vmatprep.subr.bf16.mxu1 %v316_v17  ;;  %v768_v32 = vcombine.high %v767_v23, %v767_v23  ;;  %v646_v36 = vsel %vm308_vm0, %v643_v22, 0  ;;  %v770_v37 = vsel %vm308_vm0, %v767_v23, 0  ;;  %s1675_s19 = scalar_lea.vmem %s1674_s18, 2048  ;;  %p1676_p0 = scmp.lt.s32.totalorder %s2360_s12, %s1674_s18 }
  0x21   : > { %319 = vmatpush1.bf16.msra.mxu0 %v313_v18  ;;  %1532 = vmatpush1.bf16.msra.mxu1 %v313_v18  ;;  %v520_v28 = vcombine.high %v519_v21, %v519_v21  ;;  %v522_v30 = vsel %vm308_vm0, %v519_v21, 0  ;;  %p1671_p12 = pnand %p1670_p11, %p1812_p5  ;;  %p1677_p1 = scmp.lt.s32.totalorder %s1675_s19, %s1669_s16 }
  0x22   : > { %1497 = vmatprep.subr.msk.bf16.mxu1 %vm308_vm0, %v389_v27 }
  0x23   : > { %1500 = vmatprep.subr.msk.bf16.mxu0 %vm308_vm0, %v520_v28  ;;  %p1672_p13 = pneg %p1671_p12  ;;  %p1678_p2 = por %p1677_p1, %p1676_p0 }
  0x24   : > { %1493 = vmatmul.mubr.msk.bf16.vlgmr.msra.gmra.mrb[0].mxu0 %vm301_vm2, %v1583_v25  ;;  %1494 = vmatmul.mubr.msk.bf16.vlgmr.msra.gmra.mrb[0].mxu1 %vm301_vm2, %v1584_v26 }
  0x25   : > { %404 = vmatpush1.bf16.msra.mxu1 %v398_v29  ;;  %528 = vmatpush1.bf16.msra.mxu0 %v522_v30  ;;  %p1679_p3 = pnand %p1678_p2, %p1672_p13 }
  0x26   : > { %435 = vmatprep.mubr.bf16.mxu1 %v1733_v0  ;;  %559 = vmatprep.mubr.bf16.mxu0 %v1733_v0 }
  0x27   : > { %1503 = vmatprep.subr.msk.bf16.mxu1 %vm308_vm0, %v644_v31  ;;  %1506 = vmatprep.subr.msk.bf16.mxu0 %vm308_vm0, %v768_v32 }
  0x2c   : > { %1498 = vmatmul.mubr.msk.bf16.vlgmr.msra.gmra.mrb[4].mxu1 %vm390_vm3, %v1585_v35  ;;  %1501 = vmatmul.mubr.msk.bf16.vlgmr.msra.gmra.mrb[4].mxu0 %vm390_vm3, %v1585_v35 }
  0x2d   : > { %652 = vmatpush1.bf16.msra.mxu1 %v646_v36  ;;  %776 = vmatpush1.bf16.msra.mxu0 %v770_v37 }
  0x2e   : > { %445 = vmatprep.mubr.bf16.mxu1 %v1733_v0  ;;  %569 = vmatprep.mubr.bf16.mxu0 %v1733_v0 }
  0x2f   : > { %1511 = vmatprep.subr.msk.bf16.mxu1 %vm308_vm0, %v389_v27  ;;  %1514 = vmatprep.subr.msk.bf16.mxu0 %vm308_vm0, %v520_v28 }
  0x34   : > { %1499 = vmatmul.mubr.msk.bf16.gmra.mrb[8].mxu1 %vm390_vm3, %v1586_v38  ;;  %1502 = vmatmul.mubr.msk.bf16.gmra.mrb[8].mxu0 %vm390_vm3, %v1586_v38 }
  0x35   : > { %683 = vmatprep.mubr.bf16.mxu1 %v1733_v0  ;;  %807 = vmatprep.mubr.bf16.mxu0 %v1733_v0 }
  0x3c   : > { %1504 = vmatmul.mubr.msk.bf16.vlgmr.msra.gmra.mrb[12].mxu1 %vm390_vm3, %v1585_v35  ;;  %1507 = vmatmul.mubr.msk.bf16.vlgmr.msra.gmra.mrb[12].mxu0 %vm390_vm3, %v1585_v35 }
  0x3d   : > { %693 = vmatprep.mubr.bf16.mxu1 %v1733_v0  ;;  %817 = vmatprep.mubr.bf16.mxu0 %v1733_v0 }
  0x3e   : > { %1053 = vmatpush1.bf16.msra.mxu1 %v398_v29  ;;  %1122 = vmatpush1.bf16.msra.mxu0 %v522_v30 }
  0x3f   : > { %1517 = vmatprep.subr.msk.bf16.mxu1 %vm308_vm0, %v644_v31  ;;  %1520 = vmatprep.subr.msk.bf16.mxu0 %vm308_vm0, %v768_v32 }
  0x44   : > { %1505 = vmatmul.mubr.msk.bf16.gmra.mrb[16].mxu1 %vm390_vm3, %v1586_v38  ;;  %1508 = vmatmul.mubr.msk.bf16.gmra.mrb[16].mxu0 %vm390_vm3, %v1586_v38 }
  0x45   : > { %1084 = vmatprep.mubr.bf16.mxu1 %v1733_v0  ;;  %1153 = vmatprep.mubr.bf16.mxu0 %v1733_v0 }
  0x4c   : > { %1512 = vmatmul.mubr.msk.bf16.vlgmr.msra.gmra.mrb[20].mxu1 %vm390_vm3, %v1587_v39  ;;  %1515 = vmatmul.mubr.msk.bf16.vlgmr.msra.gmra.mrb[20].mxu0 %vm390_vm3, %v1587_v39 }
  0x4d   : > { %1199 = vmatpush1.bf16.msra.mxu1 %v646_v36  ;;  %1276 = vmatpush1.bf16.msra.mxu0 %v770_v37 }
  0x4e   : > { %1094 = vmatprep.mubr.bf16.mxu1 %v1733_v0  ;;  %1163 = vmatprep.mubr.bf16.mxu0 %v1733_v0 }
  0x54   : > { %1513 = vmatmul.mubr.msk.bf16.gmra.mrb[24].mxu1 %vm390_vm3, %v1588_v40  ;;  %1516 = vmatmul.mubr.msk.bf16.gmra.mrb[24].mxu0 %vm390_vm3, %v1588_v40 }
  0x55   : > { %1230 = vmatprep.mubr.bf16.mxu1 %v1733_v0  ;;  %1307 = vmatprep.mubr.bf16.mxu0 %v1733_v0 }
  0x5c   : > { %1518 = vmatmul.mubr.msk.bf16.vlgmr.msra.gmra.mrb[28].mxu1 %vm390_vm3, %v1587_v39  ;;  %1521 = vmatmul.mubr.msk.bf16.vlgmr.msra.gmra.mrb[28].mxu0 %vm390_vm3, %v1587_v39 }
  0x5d   : > { %1240 = vmatprep.mubr.bf16.mxu1 %v1733_v0  ;;  %1317 = vmatprep.mubr.bf16.mxu0 %v1733_v0 }
  0x64   : > { %1519 = vmatmul.mubr.msk.bf16.gmra.mrb[32].mxu1 %vm390_vm3, %v1588_v40  ;;  %1522 = vmatmul.mubr.msk.bf16.gmra.mrb[32].mxu0 %vm390_vm3, %v1588_v40 }
  0xf7   : > { %v1909_v41 = vpop.f32.mrb[0].mxu0  ;;  %v1911_v42 = vpop.f32.mrb[0].mxu1 }
  0xf8   : > { %v1913_v43 = vpop.f32.mrb[1].mxu0  ;;  %v1915_v44 = vpop.f32.mrb[1].mxu1 }
  0xf9   : > { %v1917_v45 = vpop.f32.mrb[2].mxu0  ;;  %v1919_v46 = vpop.f32.mrb[2].mxu1 }
  0xfa   : > { %v1921_v47 = vpop.f32.mrb[3].mxu0  ;;  %v1923_v48 = vpop.f32.mrb[3].mxu1 }
  0xff   : > { %v437_v49 = vpop.f32.mrb[4].mxu1  ;;  %v561_v50 = vpop.f32.mrb[4].mxu0 }
 0x100   : > { %v456_v51 = vmul.f32 %v437_v49, %v1909_v41  ;;  %v580_v52 = vmul.f32 %v561_v50, %v1909_v41  ;;  %v439_v53 = vpop.f32.mrb[5].mxu1  ;;  %v563_v54 = vpop.f32.mrb[5].mxu0 }
 0x101   : > { %v457_v55 = vmul.f32 %v439_v53, %v1913_v43  ;;  %v581_v56 = vmul.f32 %v563_v54, %v1913_v43  ;;  %v441_v57 = vpop.f32.mrb[6].mxu1  ;;  %v565_v58 = vpop.f32.mrb[6].mxu0 }
 0x102   : > { %v464_v59 = vrot.slane %v456_v51, 4  ;;  %v588_v60 = vrot.slane %v580_v52, 4  ;;  %v458_v61 = vmul.f32 %v441_v57, %v1917_v45  ;;  %v582_v62 = vmul.f32 %v565_v58, %v1917_v45  ;;  %v443_v63 = vpop.f32.mrb[7].mxu1  ;;  %v567_v0 = vpop.f32.mrb[7].mxu0 }
 0x103   : > { %v470_v1 = vrot.slane %v457_v55, 4  ;;  %v594_v2 = vrot.slane %v581_v56, 4  ;;  %v459_v3 = vmul.f32 %v443_v63, %v1921_v47  ;;  %v583_v4 = vmul.f32 %v567_v0, %v1921_v47 }
 0x104   : > { %v465_v5 = vadd.f32 %v464_v59, %v456_v51  ;;  %v589_v6 = vadd.f32 %v588_v60, %v580_v52  ;;  %v476_v7 = vrot.slane %v458_v61, 4  ;;  %v600_v8 = vrot.slane %v582_v62, 4 }
 0x105   : > { %v471_v9 = vadd.f32 %v470_v1, %v457_v55  ;;  %v595_v10 = vadd.f32 %v594_v2, %v581_v56  ;;  %v482_v11 = vrot.slane %v459_v3, 4  ;;  %v606_v12 = vrot.slane %v583_v4, 4 }
 0x106   : > { %v466_v13 = vrot.slane %v465_v5, 2  ;;  %v590_v14 = vrot.slane %v589_v6, 2  ;;  %v477_v15 = vadd.f32 %v476_v7, %v458_v61  ;;  %v601_v16 = vadd.f32 %v600_v8, %v582_v62 }
 0x107   : > { %v472_v17 = vrot.slane %v471_v9, 2  ;;  %v596_v18 = vrot.slane %v595_v10, 2  ;;  %v483_v19 = vadd.f32 %v482_v11, %v459_v3  ;;  %v607_v20 = vadd.f32 %v606_v12, %v583_v4  ;;  %v447_v21 = vpop.f32.mrb[8].mxu1  ;;  %v571_v22 = vpop.f32.mrb[8].mxu0 }
 0x108   : > { %v467_v23 = vadd.f32 %v466_v13, %v465_v5  ;;  %v591_v24 = vadd.f32 %v590_v14, %v589_v6  ;;  %v478_v25 = vrot.slane %v477_v15, 2  ;;  %v602_v26 = vrot.slane %v601_v16, 2  ;;  %v449_v27 = vpop.f32.mrb[9].mxu1  ;;  %v573_v28 = vpop.f32.mrb[9].mxu0 }
 0x109   : > { %v473_v29 = vadd.f32 %v472_v17, %v471_v9  ;;  %v597_v30 = vadd.f32 %v596_v18, %v595_v10  ;;  %v484_v31 = vrot.slane %v483_v19, 2  ;;  %v608_v32 = vrot.slane %v607_v20, 2  ;;  %v451_v33 = vpop.f32.mrb[10].mxu1  ;;  %v575_v34 = vpop.f32.mrb[10].mxu0 }
 0x10a   : > { %v468_v35 = vrot.slane %v467_v23, 1  ;;  %v592_v36 = vrot.slane %v591_v24, 1  ;;  %v479_v37 = vadd.f32 %v478_v25, %v477_v15  ;;  %v603_v38 = vadd.f32 %v602_v26, %v601_v16  ;;  %v453_v39 = vpop.f32.mrb[11].mxu1  ;;  %v577_v40 = vpop.f32.mrb[11].mxu0 }
 0x10b   : > { %v474_v49 = vrot.slane %v473_v29, 1  ;;  %v598_v50 = vrot.slane %v597_v30, 1  ;;  %v485_v51 = vadd.f32 %v484_v31, %v483_v19  ;;  %v609_v52 = vadd.f32 %v608_v32, %v607_v20 }
 0x10c   : > { %v1933_v53 = vadd.f32 %v468_v35, %v467_v23  ;;  %v1935_v54 = vadd.f32 %v592_v36, %v591_v24  ;;  %v480_v55 = vrot.slane %v479_v37, 1  ;;  %v604_v56 = vrot.slane %v603_v38, 1 }
 0x10d   : > { %v1937_v57 = vadd.f32 %v474_v49, %v473_v29  ;;  %v1939_v58 = vadd.f32 %v598_v50, %v597_v30  ;;  %v486_v59 = vrot.slane %v485_v51, 1  ;;  %v610_v60 = vrot.slane %v609_v52, 1 }
 0x10e   : > { %v1943_v62 = vadd.f32 %v480_v55, %v479_v37  ;;  %v1945_v63 = vadd.f32 %v604_v56, %v603_v38  ;;  %v460_v0 = vmul.f32 %v447_v21, %v1911_v42  ;;  %v584_v4 = vmul.f32 %v571_v22, %v1911_v42 }
 0x10f   : > { %v1950_v2 = vadd.f32 %v486_v59, %v485_v51  ;;  %v1952_v3 = vadd.f32 %v610_v60, %v609_v52  ;;  %v1955_v5 = vpop.f32.mrb[12].mxu1  ;;  %v1957_v6 = vpop.f32.mrb[12].mxu0  ;;  %v461_v9 = vmul.f32 %v449_v27, %v1915_v44  ;;  %v585_v10 = vmul.f32 %v573_v28, %v1915_v44 }
 0x110   : > { %v488_v8 = vrot.slane %v460_v0, 4  ;;  %v1963_v11 = vpop.f32.mrb[13].mxu1  ;;  %v1965_v12 = vpop.f32.mrb[13].mxu0  ;;  %v612_v14 = vrot.slane %v584_v4, 4  ;;  %v462_v15 = vmul.f32 %v451_v33, %v1919_v46  ;;  %v586_v16 = vmul.f32 %v575_v34, %v1919_v46 }
 0x111   : > { %v1971_v17 = vpop.f32.mrb[14].mxu1  ;;  %v1973_v18 = vpop.f32.mrb[14].mxu0  ;;  %v494_v20 = vrot.slane %v461_v9, 4  ;;  %v618_v21 = vrot.slane %v585_v10, 4  ;;  %v463_v22 = vmul.f32 %v453_v39, %v1923_v48  ;;  %v587_v28 = vmul.f32 %v577_v40, %v1923_v48 }
 0x112   : > { %v489_v19 = vadd.f32 %v488_v8, %v460_v0  ;;  %v1976_v23 = vpop.f32.mrb[15].mxu1  ;;  %v1978_v24 = vpop.f32.mrb[15].mxu0  ;;  %v613_v25 = vadd.f32 %v612_v14, %v584_v4  ;;  %v500_v26 = vrot.slane %v462_v15, 4  ;;  %v624_v27 = vrot.slane %v586_v16, 4 }
 0x113   : > { %v495_v30 = vadd.f32 %v494_v20, %v461_v9  ;;  %v619_v31 = vadd.f32 %v618_v21, %v585_v10  ;;  %v506_v32 = vrot.slane %v463_v22, 4  ;;  %v630_v36 = vrot.slane %v587_v28, 4 }
 0x114   : > { %v490_v29 = vrot.slane %v489_v19, 2  ;;  %v614_v33 = vrot.slane %v613_v25, 2  ;;  %v501_v34 = vadd.f32 %v500_v26, %v462_v15  ;;  %v625_v35 = vadd.f32 %v624_v27, %v586_v16 }
 0x115   : > { %v496_v38 = vrot.slane %v495_v30, 2  ;;  %v620_v39 = vrot.slane %v619_v31, 2  ;;  %v507_v49 = vadd.f32 %v506_v32, %v463_v22  ;;  %v631_v55 = vadd.f32 %v630_v36, %v587_v28 }
 0x116   : > { %v491_v37 = vadd.f32 %v490_v29, %v489_v19  ;;  %v615_v50 = vadd.f32 %v614_v33, %v613_v25  ;;  %v502_v51 = vrot.slane %v501_v34, 2  ;;  %v626_v52 = vrot.slane %v625_v35, 2 }
 0x117   : > { %v1981_v56 = vpop.f32.mrb[16].mxu1  ;;  %v1983_v59 = vpop.f32.mrb[16].mxu0  ;;  %v497_v60 = vadd.f32 %v496_v38, %v495_v30  ;;  %v621_v0 = vadd.f32 %v620_v39, %v619_v31  ;;  %v508_v4 = vrot.slane %v507_v49, 2  ;;  %v632_v16 = vrot.slane %v631_v55, 2 }
 0x118   : > { %v492_v40 = vrot.slane %v491_v37, 1  ;;  %v1985_v8 = vpop.f32.mrb[17].mxu1  ;;  %v1987_v9 = vpop.f32.mrb[17].mxu0  ;;  %v616_v10 = vrot.slane %v615_v50, 1  ;;  %v503_v14 = vadd.f32 %v502_v51, %v501_v34  ;;  %v627_v15 = vadd.f32 %v626_v52, %v625_v35 }
 0x119   : > { %v1989_v19 = vpop.f32.mrb[18].mxu1  ;;  %v1991_v20 = vpop.f32.mrb[18].mxu0  ;;  %v498_v22 = vrot.slane %v497_v60, 1  ;;  %v622_v25 = vrot.slane %v621_v0, 1  ;;  %v509_v26 = vadd.f32 %v508_v4, %v507_v49  ;;  %v633_v32 = vadd.f32 %v632_v16, %v631_v55 }
 0x11a   : > { %v1993_v21 = vadd.f32 %v492_v40, %v491_v37  ;;  %v1995_v27 = vpop.f32.mrb[19].mxu1  ;;  %v1997_v28 = vpop.f32.mrb[19].mxu0  ;;  %v1999_v29 = vadd.f32 %v616_v10, %v615_v50  ;;  %v504_v30 = vrot.slane %v503_v14, 1  ;;  %v628_v31 = vrot.slane %v627_v15, 1 }
 0x11b   : > { %v2001_v33 = vadd.f32 %v498_v22, %v497_v60  ;;  %v2003_v34 = vadd.f32 %v622_v25, %v621_v0  ;;  %v510_v35 = vrot.slane %v509_v26, 1  ;;  %v704_v36 = vmul.f32 %v1955_v5, %v1909_v41 }
 0x11c   : > { %v2009_v38 = vadd.f32 %v504_v30, %v503_v14  ;;  %v2011_v39 = vadd.f32 %v628_v31, %v627_v15  ;;  %v634_v49 = vrot.slane %v633_v32, 1  ;;  %v828_v55 = vmul.f32 %v1957_v6, %v1909_v41 }
 0x11d   : > { %v2015_v51 = vadd.f32 %v510_v35, %v509_v26  ;;  %v712_v52 = vrot.slane %v704_v36, 4  ;;  %v705_v60 = vmul.f32 %v1963_v11, %v1913_v43  ;;  %v829_v0 = vmul.f32 %v1965_v12, %v1913_v43 }
 0x11e   : > { %v2021_v40 = vadd.f32 %v634_v49, %v633_v32  ;;  %v836_v15 = vrot.slane %v828_v55, 4  ;;  %v706_v41 = vmul.f32 %v1971_v17, %v1917_v45  ;;  %v830_v6 = vmul.f32 %v1973_v18, %v1917_v45 }
 0x11f   : > { %v2027_v4 = vpop.f32.mrb[20].mxu1  ;;  %v2029_v10 = vpop.f32.mrb[20].mxu0  ;;  %v713_v14 = vadd.f32 %v712_v52, %v704_v36  ;;  %v718_v43 = vrot.slane %v705_v60, 4  ;;  %v842_v12 = vrot.slane %v829_v0, 4  ;;  %v707_v25 = vmul.f32 %v1976_v23, %v1921_v47 }
 0x120   : > { %v2035_v16 = vpop.f32.mrb[21].mxu1  ;;  %v2037_v22 = vpop.f32.mrb[21].mxu0  ;;  %v837_v31 = vadd.f32 %v836_v15, %v828_v55  ;;  %v724_v32 = vrot.slane %v706_v41, 4  ;;  %v848_v45 = vrot.slane %v830_v6, 4  ;;  %v831_v11 = vmul.f32 %v1978_v24, %v1921_v47 }
 0x121   : > { %v2043_v26 = vpop.f32.mrb[22].mxu1  ;;  %v2045_v30 = vpop.f32.mrb[22].mxu0  ;;  %v714_v17 = vrot.slane %v713_v14, 2  ;;  %v719_v36 = vadd.f32 %v718_v43, %v705_v60  ;;  %v843_v49 = vadd.f32 %v842_v12, %v829_v0  ;;  %v730_v52 = vrot.slane %v707_v25, 4 }
 0x122   : > { %2415 = vst [vmem:[#allocation5_spill] sm:$0xff] %v2043_v26  ;;  %2416 = vst [vmem:[#allocation6_spill] sm:$0xff] %v2045_v30  ;;  %v2047_v18 = vpop.f32.mrb[23].mxu1  ;;  %v2049_v35 = vpop.f32.mrb[23].mxu0  ;;  %v838_v23 = vrot.slane %v837_v31, 2  ;;  %v725_v50 = vadd.f32 %v724_v32, %v706_v41  ;;  %v849_v37 = vadd.f32 %v848_v45, %v830_v6  ;;  %v854_v55 = vrot.slane %v831_v11, 4 }
 0x123   : > { %2417 = vst [vmem:[#allocation7_spill] sm:$0xff] %v2047_v18  ;;  %2418 = vst [vmem:[#allocation8_spill] sm:$0xff] %v2049_v35  ;;  %v715_v5 = vadd.f32 %v714_v17, %v713_v14  ;;  %v720_v13 = vrot.slane %v719_v36, 2  ;;  %v844_v7 = vrot.slane %v843_v49, 2  ;;  %v731_v1 = vadd.f32 %v730_v52, %v707_v25 }
 0x124   : > { %v839_v61 = vadd.f32 %v838_v23, %v837_v31  ;;  %v726_v30 = vrot.slane %v725_v50, 2  ;;  %v850_v18 = vrot.slane %v849_v37, 2  ;;  %v855_v0 = vadd.f32 %v854_v55, %v831_v11 }
 0x125   : > { %v716_v15 = vrot.slane %v715_v5, 1  ;;  %v721_v26 = vadd.f32 %v720_v13, %v719_v36  ;;  %v845_v35 = vadd.f32 %v844_v7, %v843_v49  ;;  %v732_v60 = vrot.slane %v731_v1, 2 }
 0x126   : > { %v840_v24 = vrot.slane %v839_v61, 1  ;;  %v727_v14 = vadd.f32 %v726_v30, %v725_v50  ;;  %v851_v41 = vadd.f32 %v850_v18, %v849_v37  ;;  %v856_v45 = vrot.slane %v855_v0, 2 }
 0x127   : > { %v2053_v43 = vpop.f32.mrb[24].mxu1  ;;  %v2055_v12 = vpop.f32.mrb[24].mxu0  ;;  %v717_v47 = vadd.f32 %v716_v15, %v715_v5  ;;  %v722_v17 = vrot.slane %v721_v26, 1  ;;  %v846_v31 = vrot.slane %v845_v35, 1  ;;  %v733_v32 = vadd.f32 %v732_v60, %v731_v1 }
 0x128   : > { %v2057_v6 = vpop.f32.mrb[25].mxu1  ;;  %v2059_v25 = vpop.f32.mrb[25].mxu0  ;;  %v2422_v11 = vmax.f32 %v1933_v53, %v1935_v54  ;;  %v841_v5 = vadd.f32 %v840_v24, %v839_v61  ;;  %v728_v49 = vrot.slane %v727_v14, 1  ;;  %v852_v50 = vrot.slane %v851_v41, 1 }
 0x129   : > { %2419 = vst [vmem:[#allocation9_spill] sm:$0xff] %v2059_v25  ;;  %v2061_v13 = vpop.f32.mrb[26].mxu1  ;;  %v2063_v7 = vpop.f32.mrb[26].mxu0  ;;  %v723_v18 = vadd.f32 %v722_v17, %v721_v26  ;;  %v847_v52 = vadd.f32 %v846_v31, %v845_v35  ;;  %v734_v23 = vrot.slane %v733_v32, 1  ;;  %v857_v1 = vadd.f32 %v856_v45, %v855_v0 }
 0x12a   : > { %2420 = vst [vmem:[#allocation10_spill] sm:$0xff] %v2061_v13  ;;  %2421 = vst [vmem:[#allocation11_spill] sm:$0xff] %v2063_v7  ;;  %v892_v36 = vmax.f32 %v2422_v11, %v717_v47  ;;  %v2068_v37 = vpop.f32.mrb[27].mxu1  ;;  %v2070_v30 = vpop.f32.mrb[27].mxu0  ;;  %v729_v15 = vadd.f32 %v728_v49, %v727_v14  ;;  %v853_v60 = vadd.f32 %v852_v50, %v851_v41 }
 0x12b   : > { %2423 = vst [vmem:[#allocation12_spill] sm:$0xff] %v2068_v37  ;;  %2424 = vst [vmem:[#allocation13_spill] sm:$0xff] %v2070_v30  ;;  %v708_v7 = vmul.f32 %v1981_v56, %v1911_v42  ;;  %v2425_v61 = vmax.f32 %v1937_v57, %v1939_v58  ;;  %v735_v11 = vadd.f32 %v734_v23, %v733_v32  ;;  %v858_v13 = vrot.slane %v857_v1, 1 }
 0x12c   : > { %v2072_v55 = vmax.f32 %v892_v36, %v841_v5  ;;  %v832_v30 = vmul.f32 %v1983_v59, %v1911_v42  ;;  %v2426_v14 = vmax.f32 %v1943_v62, %v1945_v63  ;;  %v2427_v17 = vmax.f32 %v1950_v2, %v1952_v3 }
 0x12d   : > { %v893_v24 = vmax.f32 %v2425_v61, %v723_v18  ;;  %v859_v32 = vadd.f32 %v858_v13, %v857_v1  ;;  %v736_v45 = vrot.slane %v708_v7, 4 }
 0x12e   : > { %v932_v26 = vsub.f32 %v1935_v54, %v2072_v55  ;;  %v956_v35 = vsub.f32 %v717_v47, %v2072_v55  ;;  %v980_v0 = vsub.f32 %v841_v5, %v2072_v55  ;;  %v894_v56 = vmax.f32 %v2426_v14, %v729_v15 }
 0x12f   : > { %v2088_v41 = vmax.f32 %v893_v24, %v847_v52  ;;  %v895_v31 = vmax.f32 %v2427_v17, %v735_v11  ;;  %v2093_v42 = vpop.f32.mrb[28].mxu1  ;;  %v2095_v59 = vpop.f32.mrb[28].mxu0 }
 0x130   : > { %v940_v54 = vmul.f32 1.442695, %v932_v26  ;;  %v964_v47 = vmul.f32 1.442695, %v956_v35  ;;  %v988_v36 = vmul.f32 1.442695, %v980_v0  ;;  %v2097_v5 = vmax.f32 %v894_v56, %v853_v60 }
 0x131   : > { %v933_v49 = vsub.f32 %v1939_v58, %v2088_v41  ;;  %v957_v50 = vsub.f32 %v723_v18, %v2088_v41  ;;  %v981_v23 = vsub.f32 %v847_v52, %v2088_v41  ;;  %v2103_v61 = vmax.f32 %v895_v31, %v859_v32  ;;  %v2105_v13 = vpop.f32.mrb[29].mxu1  ;;  %v2107_v1 = vpop.f32.mrb[29].mxu0 }
 0x132   : > { %1589 = vpow2.f32 %v940_v54  ;;  %v934_v24 = vsub.f32 %v1945_v63, %v2097_v5  ;;  %v958_v26 = vsub.f32 %v729_v15, %v2097_v5  ;;  %v982_v35 = vsub.f32 %v853_v60, %v2097_v5  ;;  %v2113_v0 = vpop.f32.mrb[30].mxu1  ;;  %v2115_v58 = vpop.f32.mrb[30].mxu0 }
 0x133   : > { %2428 = vst [vmem:[#allocation14_spill] sm:$0xff] %v2115_v58  ;;  %1591 = vpow2.f32 %v964_v47  ;;  %v942_v18 = vmul.f32 1.442695, %v933_v49  ;;  %v966_v52 = vmul.f32 1.442695, %v957_v50  ;;  %v935_v17 = vsub.f32 %v1952_v3, %v2103_v61  ;;  %v2121_v31 = vpop.f32.mrb[31].mxu1 }
 0x134   : > { %v990_v14 = vmul.f32 1.442695, %v981_v23  ;;  %1593 = vpow2.f32 %v988_v36  ;;  %v944_v56 = vmul.f32 1.442695, %v934_v24  ;;  %v959_v63 = vsub.f32 %v735_v11, %v2103_v61  ;;  %2429 = vst [vmem:[#allocation15_spill] sm:$0xff] %v2121_v31  ;;  %v2123_v60 = vpop.f32.mrb[31].mxu0 }
 0x135   : > { %1595 = vpow2.f32 %v942_v18  ;;  %v983_v15 = vsub.f32 %v859_v32, %v2103_v61  ;;  %2430 = vst [vmem:[#allocation16_spill] sm:$0xff] %v2123_v60  ;;  %v737_v54 = vadd.f32 %v736_v45, %v708_v7  ;;  %v860_v47 = vrot.slane %v832_v30, 4 }
 0x136   : > { %1597 = vpow2.f32 %v966_v52  ;;  %v709_v49 = vmul.f32 %v1985_v8, %v1915_v44  ;;  %v968_v36 = vmul.f32 1.442695, %v958_v26  ;;  %v992_v50 = vmul.f32 1.442695, %v982_v35 }
 0x137   : > { %1599 = vpow2.f32 %v990_v14  ;;  %v946_v23 = vmul.f32 1.442695, %v935_v17  ;;  %v2127_v24 = vmul.f32 1.442695, %v959_v63  ;;  %v738_v3 = vrot.slane %v737_v54, 2  ;;  %v2129_v32 = vpop.f32.mrb[32].mxu1 }
 0x138   : > { %v861_v11 = vadd.f32 %v860_v47, %v832_v30  ;;  %v742_v18 = vrot.slane %v709_v49, 4  ;;  %2431 = vst [vmem:[#allocation17_spill] sm:$0xff] %v2129_v32  ;;  %v2131_v37 = vpop.f32.mrb[32].mxu0  ;;  %v2133_v60 = vmul.f32 1.442695, %v983_v15  ;;  %v833_v7 = vmul.f32 %v1987_v9, %v1915_v44  ;;  %v2141_v26 = vpop.f32.mrb[33].mxu1 }
 0x139   : > { %2432 = vst [vmem:[#allocation18_spill] sm:$0xff] %v2131_v37  ;;  %v710_v8 = vmul.f32 %v1989_v19, %v1919_v46  ;;  %v834_v45 = vmul.f32 %v1991_v20, %v1919_v46  ;;  %2433 = vst [vmem:[#allocation19_spill] sm:$0xff] %v2141_v26  ;;  %v2143_v35 = vpop.f32.mrb[33].mxu0  ;;  %1601 = vpow2.f32 %v944_v56  ;;  %v739_v30 = vadd.f32 %v738_v3, %v737_v54  ;;  %v2145_v17 = vpop.f32.mrb[34].mxu1 }
 0x13a   : > { %2434 = vst [vmem:[#allocation20_spill] sm:$0xff] %v2143_v35  ;;  %v862_v52 = vrot.slane %v861_v11, 2  ;;  %v743_v14 = vadd.f32 %v742_v18, %v709_v49  ;;  %2435 = vst [vmem:[#allocation21_spill] sm:$0xff] %v2145_v17  ;;  %v2147_v63 = vpop.f32.mrb[34].mxu0  ;;  %1603 = vpow2.f32 %v968_v36  ;;  %v866_v44 = vrot.slane %v833_v7, 4  ;;  %v2149_v19 = vpop.f32.mrb[35].mxu1 }
 0x13b   : > { %2436 = vst [vmem:[#allocation22_spill] sm:$0xff] %v2147_v63  ;;  %v748_v9 = vrot.slane %v710_v8, 4  ;;  %v872_v15 = vrot.slane %v834_v45, 4  ;;  %2437 = vst [vmem:[#allocation23_spill] sm:$0xff] %v2149_v19  ;;  %v2151_v47 = vpop.f32.mrb[35].mxu0  ;;  %1605 = vpow2.f32 %v992_v50  ;;  %v740_v20 = vrot.slane %v739_v30, 1 }
 0x13c   : > { %2438 = vst [vmem:[#allocation24_spill] sm:$0xff] %v2151_v47  ;;  %v2153_v46 = vpop.eup %1589  ;;  %v863_v56 = vadd.f32 %v862_v52, %v861_v11  ;;  %v744_v54 = vrot.slane %v743_v14, 2  ;;  %1607 = vpow2.f32 %v946_v23  ;;  %v867_v49 = vadd.f32 %v866_v44, %v833_v7 }
 0x13d   : > { %v2155_v3 = vpop.eup %1591  ;;  %v749_v18 = vadd.f32 %v748_v9, %v710_v8  ;;  %v873_v63 = vadd.f32 %v872_v15, %v834_v45  ;;  %v741_v17 = vadd.f32 %v740_v20, %v739_v30  ;;  %v711_v47 = vmul.f32 %v1995_v27, %v1923_v48 }
 0x13e   : > { %v2157_v36 = vpop.eup %1593  ;;  %v864_v35 = vrot.slane %v863_v56, 1  ;;  %v745_v26 = vadd.f32 %v744_v54, %v743_v14  ;;  %v868_v50 = vrot.slane %v867_v49, 2  ;;  %v835_v52 = vmul.f32 %v1997_v28, %v1923_v48 }
 0x13f   : > { %v2161_v19 = vpop.eup %1595  ;;  %v750_v37 = vrot.slane %v749_v18, 2  ;;  %v874_v11 = vrot.slane %v873_v63, 2  ;;  %v2439_v7 = vmax.f32 %v1993_v21, %v1999_v29  ;;  %v754_v14 = vrot.slane %v711_v47, 4 }
 0x140   : > { %v2165_v23 = vpop.eup %1597  ;;  %v865_v45 = vadd.f32 %v864_v35, %v863_v56  ;;  %v746_v30 = vrot.slane %v745_v26, 1  ;;  %v869_v27 = vadd.f32 %v868_v50, %v867_v49  ;;  %v878_v20 = vrot.slane %v835_v52, 4 }
 0x141   : > { %v896_v8 = vmax.f32 %v2439_v7, %v741_v17  ;;  %v2170_v44 = vpop.eup %1599  ;;  %v751_v9 = vadd.f32 %v750_v37, %v749_v18  ;;  %v875_v15 = vadd.f32 %v874_v11, %v873_v63  ;;  %v755_v31 = vadd.f32 %v754_v14, %v711_v47 }
 0x142   : > { %v747_v32 = vadd.f32 %v746_v30, %v745_v26  ;;  %v908_v48 = vsub.f32 %v1933_v53, %v2072_v55  ;;  %v870_v28 = vrot.slane %v869_v27, 1  ;;  %v879_v7 = vadd.f32 %v878_v20, %v835_v52 }
 0x143   : > { %v2172_v54 = vmax.f32 %v896_v8, %v865_v45  ;;  %v752_v58 = vrot.slane %v751_v9, 1  ;;  %v876_v25 = vrot.slane %v875_v15, 1  ;;  %v2176_v35 = vpop.eup %1601  ;;  %v2440_v26 = vmax.f32 %v2001_v33, %v2003_v34 }
 0x144   : > { %v2185_v49 = vpop.eup %1603  ;;  %1609 = vpow2.f32 %v2127_v24  ;;  %v871_v53 = vadd.f32 %v870_v28, %v869_v27  ;;  %v756_v18 = vrot.slane %v755_v31, 2  ;;  %v2441_v8 = vmax.f32 %v2009_v38, %v2011_v39 }
 0x145   : > { %v936_v56 = vsub.f32 %v1999_v29, %v2172_v54  ;;  %v960_v37 = vsub.f32 %v741_v17, %v2172_v54  ;;  %v984_v63 = vsub.f32 %v865_v45, %v2172_v54  ;;  %v897_v47 = vmax.f32 %v2440_v26, %v747_v32  ;;  %v2188_v50 = vpop.eup %1605 }
 0x146   : > { %v753_v55 = vadd.f32 %v752_v58, %v751_v9  ;;  %1611 = vpow2.f32 %v2133_v60  ;;  %v909_v17 = vsub.f32 %v1937_v57, %v2088_v41  ;;  %v2193_v11 = vpop.eup %1607  ;;  %v757_v30 = vadd.f32 %v756_v18, %v755_v31 }
 0x147   : > { %v948_v29 = vmul.f32 1.442695, %v936_v56  ;;  %v905_v52 = vmax.f32 %v897_v47, %v871_v53  ;;  %v880_v24 = vrot.slane %v879_v7, 2  ;;  %v972_v14 = vmul.f32 1.442695, %v960_v37 }
 0x148   : > { %v898_v45 = vmax.f32 %v2441_v8, %v753_v55  ;;  %v877_v58 = vadd.f32 %v876_v25, %v875_v15  ;;  %v916_v27 = vmul.f32 1.442695, %v908_v48  ;;  %v910_v9 = vsub.f32 %v1943_v62, %v2097_v5 }
 0x149   : > { %v996_v60 = vmul.f32 1.442695, %v984_v63  ;;  %v937_v20 = vsub.f32 %v2003_v34, %v905_v52  ;;  %v961_v28 = vsub.f32 %v747_v32, %v905_v52  ;;  %v985_v57 = vsub.f32 %v871_v53, %v905_v52 }
 0x14a   : > { %1613 = vpow2.f32 %v948_v29  ;;  %v906_v41 = vmax.f32 %v898_v45, %v877_v58  ;;  %v758_v56 = vrot.slane %v757_v30, 1  ;;  %v881_v26 = vadd.f32 %v880_v24, %v879_v7 }
 0x14b   : > { %v950_v47 = vmul.f32 1.442695, %v937_v20  ;;  %1615 = vpow2.f32 %v916_v27  ;;  %v974_v15 = vmul.f32 1.442695, %v961_v28  ;;  %v911_v62 = vsub.f32 %v1950_v2, %v2103_v61 }
 0x14c   : > { %v938_v31 = vsub.f32 %v2011_v39, %v906_v41  ;;  %v962_v18 = vsub.f32 %v753_v55, %v906_v41  ;;  %v986_v37 = vsub.f32 %v877_v58, %v906_v41  ;;  %v759_v25 = vadd.f32 %v758_v56, %v757_v30 }
 0x14d   : > { %1617 = vpow2.f32 %v972_v14  ;;  %v882_v48 = vrot.slane %v881_v26, 1  ;;  %v998_v34 = vmul.f32 1.442695, %v985_v57  ;;  %v2442_v32 = vmax.f32 %v2015_v51, %v2021_v40 }
 0x14e   : > { %1619 = vpow2.f32 %v996_v60  ;;  %v2204_v5 = vpop.eup %1609  ;;  %v918_v39 = vmul.f32 1.442695, %v909_v17  ;;  %v920_v55 = vmul.f32 1.442695, %v910_v9  ;;  %v912_v29 = vsub.f32 %v1993_v21, %v2172_v54 }
 0x14f   : > { %1621 = vpow2.f32 %v950_v47  ;;  %v899_v7 = vmax.f32 %v2442_v32, %v759_v25  ;;  %v883_v63 = vadd.f32 %v882_v48, %v881_v26  ;;  %v913_v8 = vsub.f32 %v2001_v33, %v905_v52 }
 0x150   : > { %v2209_v53 = vpop.eup %1611  ;;  %v914_v2 = vsub.f32 %v2009_v38, %v906_v41  ;;  %1623 = vpow2.f32 %v974_v15  ;;  %v922_v45 = vmul.f32 1.442695, %v911_v62  ;;  %v952_v30 = vmul.f32 1.442695, %v938_v31 }
 0x151   : > { %v907_v61 = vmax.f32 %v899_v7, %v883_v63  ;;  %1625 = vpow2.f32 %v998_v34  ;;  %v924_v24 = vmul.f32 1.442695, %v912_v29  ;;  %v976_v9 = vmul.f32 1.442695, %v962_v18 }
 0x152   : > { %1627 = vpow2.f32 %v918_v39  ;;  %v926_v52 = vmul.f32 1.442695, %v913_v8  ;;  %v1000_v41 = vmul.f32 1.442695, %v986_v37 }
 0x153   : > { %v939_v14 = vsub.f32 %v2021_v40, %v907_v61  ;;  %v963_v58 = vsub.f32 %v759_v25, %v907_v61  ;;  %v987_v17 = vsub.f32 %v883_v63, %v907_v61  ;;  %1629 = vpow2.f32 %v920_v55 }
 0x154   : > { %v2216_v27 = vpop.eup %1613  ;;  %v915_v21 = vsub.f32 %v2015_v51, %v907_v61  ;;  %1631 = vpow2.f32 %v922_v45  ;;  %v928_v40 = vmul.f32 1.442695, %v914_v2 }
 0x155   : > { %v1616_v33 = vpop.eup %1615  ;;  %v954_v54 = vmul.f32 1.442695, %v939_v14  ;;  %1633 = vpow2.f32 %v924_v24  ;;  %v978_v47 = vmul.f32 1.442695, %v963_v58  ;;  %v1002_v25 = vmul.f32 1.442695, %v987_v17 }
 0x156   : > { %v1004_v38 = vadd.f32 %v1616_v33, %v2153_v46  ;;  %1635 = vpow2.f32 %v952_v30  ;;  %v930_v51 = vmul.f32 1.442695, %v915_v21 }
 0x157   : > { %v2220_v60 = vpop.eup %1617  ;;  %1637 = vpow2.f32 %v976_v9 }
 0x158   : > { %v2222_v20 = vpop.eup %1619  ;;  %v1012_v28 = vadd.f32 %v2155_v3, %v1004_v38  ;;  %1639 = vpow2.f32 %v954_v54 }
 0x159   : > { %v2225_v57 = vpop.eup %1621  ;;  %1641 = vpow2.f32 %v926_v52 }
 0x15a   : > { %v1020_v56 = vadd.f32 %v2157_v36, %v1012_v28  ;;  %v2228_v26 = vpop.eup %1623  ;;  %1643 = vpow2.f32 %v928_v40 }
 0x15b   : > { %v2230_v31 = vpop.eup %1625 }
 0x15c   : > { %1645 = vrcp.f32 %v1020_v56  ;;  %v1628_v18 = vpop.eup %1627 }
 0x15d   : > { %1647 = vpow2.f32 %v930_v51  ;;  %v1630_v15 = vpop.eup %1629  ;;  %v1005_v48 = vadd.f32 %v1628_v18, %v2161_v19 }
 0x15e   : > { %1649 = vpow2.f32 %v1000_v41  ;;  %v2233_v62 = vpop.eup %1631  ;;  %v1006_v37 = vadd.f32 %v1630_v15, %v2176_v35 }
 0x15f   : > { %1651 = vpow2.f32 %v978_v47  ;;  %v2236_v34 = vpop.eup %1633  ;;  %v1013_v32 = vadd.f32 %v2165_v23, %v1005_v48  ;;  %v1007_v7 = vadd.f32 %v2233_v62, %v2193_v11 }
 0x160   : > { %v2241_v63 = vpop.eup %1635  ;;  %1653 = vpow2.f32 %v1002_v25  ;;  %v1014_v39 = vadd.f32 %v2185_v49, %v1006_v37  ;;  %v1008_v55 = vadd.f32 %v2236_v34, %v2216_v27 }
 0x161   : > { %v2246_v29 = vpop.eup %1637  ;;  %v1021_v8 = vadd.f32 %v2170_v44, %v1013_v32  ;;  %v1015_v2 = vadd.f32 %v2204_v5, %v1007_v7 }
 0x162   : > { %v2250_v61 = vpop.eup %1639  ;;  %v1022_v45 = vadd.f32 %v2188_v50, %v1014_v39  ;;  %v1016_v30 = vadd.f32 %v2220_v60, %v1008_v55 }
 0x163   : > { %v2254_v24 = vpop.eup %1641  ;;  %1655 = vrcp.f32 %v1021_v8  ;;  %v1023_v14 = vadd.f32 %v2209_v53, %v1015_v2 }
 0x164   : > { %v2257_v58 = vpop.eup %1643  ;;  %1657 = vrcp.f32 %v1022_v45  ;;  %v1024_v17 = vadd.f32 %v2222_v20, %v1016_v30  ;;  %v1009_v9 = vadd.f32 %v2254_v24, %v2225_v57 }
 0x165   : > { %1659 = vrcp.f32 %v1023_v14  ;;  %v1010_v54 = vadd.f32 %v2257_v58, %v2241_v63 }
 0x166   : > { %v1646_v21 = vpop.eup %1645  ;;  %1661 = vrcp.f32 %v1024_v17  ;;  %v1017_v28 = vadd.f32 %v2228_v26, %v1009_v9 }
 0x167   : > { %v2264_v38 = vpop.eup %1647  ;;  %v1105_v52 = vmul.f32 %v1646_v21, %v1616_v33  ;;  %v1174_v40 = vmul.f32 %v1646_v21, %v2153_v46  ;;  %v1018_v41 = vadd.f32 %v2246_v29, %v1010_v54  ;;  %v1251_v47 = vmul.f32 %v1646_v21, %v2155_v3 }
 0x168   : > { %v2268_v51 = vpop.eup %1649  ;;  %v1011_v56 = vadd.f32 %v2264_v38, %v2250_v61  ;;  %v1328_v25 = vmul.f32 %v1646_v21, %v2157_v36  ;;  %v1025_v37 = vadd.f32 %v2230_v31, %v1017_v28 }
 0x169   : > { %v2275_v48 = vpop.eup %1651  ;;  %v1113_v33 = vmul.f32 %v1105_v52, %v2027_v4  ;;  %v1182_v46 = vmul.f32 %v1174_v40, %v2029_v10  ;;  %v1026_v32 = vadd.f32 %v2268_v51, %v1018_v41  ;;  %v1259_v39 = vmul.f32 %v1251_v47, %v2093_v42  ;;  %v2443_v41 = vld [vmem:[#allocation5_spill] sm:$0xff] }
 0x16a   : > { %v1019_v7 = vadd.f32 %v2275_v48, %v1011_v56  ;;  %v1336_v55 = vmul.f32 %v1328_v25, %v2095_v59  ;;  %v2284_v8 = vpop.eup %1653  ;;  %1663 = vrcp.f32 %v1025_v37  ;;  %v2444_v56 = vld [vmem:[#allocation6_spill] sm:$0xff] }
 0x16b   : > { %v1190_v3 = vadd.f32 %v1182_v46, %v1113_v33  ;;  %1665 = vrcp.f32 %v1026_v32  ;;  %v2446_v33 = vld [vmem:[#allocation8_spill] sm:$0xff] }
 0x16c   : > { %v1027_v36 = vadd.f32 %v2284_v8, %v1019_v7 }
 0x16d   : > { %v1267_v4 = vadd.f32 %v1259_v39, %v1190_v3  ;;  %v1656_v2 = vpop.eup %1655 }
 0x16e   : > { %1667 = vrcp.f32 %v1027_v36  ;;  %v1658_v10 = vpop.eup %1657  ;;  %v1106_v45 = vmul.f32 %v1656_v2, %v1628_v18  ;;  %v1175_v30 = vmul.f32 %v1656_v2, %v2161_v19  ;;  %v1252_v17 = vmul.f32 %v1656_v2, %v2165_v23 }
 0x16f   : > { %v1344_v14 = vadd.f32 %v1336_v55, %v1267_v4  ;;  %v1660_v42 = vpop.eup %1659  ;;  %v1107_v9 = vmul.f32 %v1658_v10, %v1630_v15  ;;  %v1176_v59 = vmul.f32 %v1658_v10, %v2176_v35  ;;  %v1329_v21 = vmul.f32 %v1656_v2, %v2170_v44  ;;  %v2445_v44 = vld [vmem:[#allocation7_spill] sm:$0xff] }
 0x170   : > { %v1253_v54 = vmul.f32 %v1658_v10, %v2185_v49  ;;  %v1662_v52 = vpop.eup %1661  ;;  %v1114_v40 = vmul.f32 %v1106_v45, %v2035_v16  ;;  %v1108_v28 = vmul.f32 %v1660_v42, %v2233_v62  ;;  %v1183_v18 = vmul.f32 %v1175_v30, %v2037_v22 }
 0x171   : > { %v1177_v19 = vmul.f32 %v1660_v42, %v2193_v11  ;;  %v1115_v23 = vmul.f32 %v1107_v9, %v2443_v41  ;;  %v1184_v15 = vmul.f32 %v1176_v59, %v2444_v56  ;;  %v1109_v35 = vmul.f32 %v1662_v52, %v2236_v34  ;;  %v2449_v9 = vld [vmem:[#allocation15_spill] sm:$0xff]  ;;  %v2450_v59 = vld [vmem:[#allocation10_spill] sm:$0xff]  ;;  %v2453_v56 = vld [vmem:[#allocation13_spill] sm:$0xff] }
 0x172   : > { %v1178_v47 = vmul.f32 %v1662_v52, %v2216_v27  ;;  %v1116_v25 = vmul.f32 %v1108_v28, %v2445_v44  ;;  %v1191_v49 = vadd.f32 %v1183_v18, %v1114_v40  ;;  %v1260_v16 = vmul.f32 %v1252_v17, %v2105_v13 }
 0x173   : > { %v1185_v46 = vmul.f32 %v1177_v19, %v2446_v33  ;;  %v1192_v22 = vadd.f32 %v1184_v15, %v1115_v23  ;;  %v1117_v11 = vmul.f32 %v1109_v35, %v2053_v43  ;;  %v1337_v37 = vmul.f32 %v1329_v21, %v2107_v1  ;;  %v1359_v43 = vpop.permute.xlu0 %1358 }
 0x174   : > { %v1186_v62 = vmul.f32 %v1178_v47, %v2055_v12  ;;  %v1664_v32 = vpop.eup %1663  ;;  %v1268_v7 = vadd.f32 %v1260_v16, %v1191_v49  ;;  %v1261_v27 = vmul.f32 %v1253_v54, %v2113_v0  ;;  %v1330_v39 = vmul.f32 %v1658_v10, %v2188_v50  ;;  %v2447_v10 = vld [vmem:[#allocation9_spill] sm:$0xff]  ;;  %v2451_v54 = vld [vmem:[#allocation11_spill] sm:$0xff]  ;;  %v2454_v47 = vld [vmem:[#allocation16_spill] sm:$0xff] }
 0x175   : > { %v1193_v34 = vadd.f32 %v1185_v46, %v1116_v25  ;;  %v1666_v55 = vpop.eup %1665  ;;  %v1110_v3 = vmul.f32 %v1664_v32, %v2254_v24  ;;  %v1179_v36 = vmul.f32 %v1664_v32, %v2225_v57  ;;  %v1254_v4 = vmul.f32 %v1660_v42, %v2204_v5  ;;  %v2448_v24 = vld [vmem:[#allocation14_spill] sm:$0xff]  ;;  %v2455_v46 = vld [vmem:[#allocation17_spill] sm:$0xff] }
 0x176   : > { %v1194_v13 = vadd.f32 %v1186_v62, %v1117_v11  ;;  %v1111_v12 = vmul.f32 %v1666_v55, %v2257_v58  ;;  %v1180_v1 = vmul.f32 %v1666_v55, %v2241_v63  ;;  %v1345_v2 = vadd.f32 %v1337_v37, %v1268_v7  ;;  %v2457_v62 = vld [vmem:[#allocation19_spill] sm:$0xff]  ;;  %v2459_v7 = vld [vmem:[#allocation21_spill] sm:$0xff] }
 0x177   : > { %v1269_v45 = vadd.f32 %v1261_v27, %v1192_v22  ;;  %v1118_v50 = vmul.f32 %v1110_v3, %v2057_v6  ;;  %v1187_v30 = vmul.f32 %v1179_v36, %v2447_v10  ;;  %v1338_v17 = vmul.f32 %v1330_v39, %v2448_v24  ;;  %v2452_v6 = vld [vmem:[#allocation12_spill] sm:$0xff]  ;;  %v2456_v22 = vld [vmem:[#allocation18_spill] sm:$0xff] }
 0x178   : > { %v1668_v0 = vpop.eup %1667  ;;  %v1262_v57 = vmul.f32 %v1254_v4, %v2449_v9  ;;  %v1119_v5 = vmul.f32 %v1111_v12, %v2450_v59  ;;  %v1188_v40 = vmul.f32 %v1180_v1, %v2451_v54  ;;  %v1331_v18 = vmul.f32 %v1660_v42, %v2209_v53  ;;  %v2460_v4 = vld [vmem:[#allocation22_spill] sm:$0xff] }
 0x179   : > { %v1112_v21 = vmul.f32 %v1668_v0, %v2264_v38  ;;  %v1181_v58 = vmul.f32 %v1668_v0, %v2250_v61  ;;  %v1195_v63 = vadd.f32 %v1187_v30, %v1118_v50  ;;  %v1376_v19 = vadd.f32 %v1359_v43, %v1344_v14  ;;  %v1364_v14 = vpop.permute.xlu0 %1363 }
 0x17a   : > { %v1270_v28 = vadd.f32 %v1262_v57, %v1193_v34  ;;  %v1196_v23 = vadd.f32 %v1188_v40, %v1119_v5  ;;  %v1377_v35 = vadd.f32 %v1359_v43, %v1345_v2  ;;  %v1339_v44 = vmul.f32 %v1331_v18, %v2454_v47 }
 0x17b   : > { %v1120_v41 = vmul.f32 %v1112_v21, %v2452_v6  ;;  %v1189_v15 = vmul.f32 %v1181_v58, %v2453_v56  ;;  %1384 = vst [vmem:[%s2328_s10] sm:$0xff] %v1376_v19  ;;  %v1255_v61 = vmul.f32 %v1662_v52, %v2220_v60  ;;  %v1332_v38 = vmul.f32 %v1662_v52, %v2222_v20  ;;  %v1369_v20 = vpop.permute.xlu1 %1368  ;;  %v2458_v52 = vld [vmem:[#allocation20_spill] sm:$0xff] }
 0x17c   : > { %v1256_v53 = vmul.f32 %v1664_v32, %v2228_v26  ;;  %1385 = vst [vmem:[%s2328_s10 + $0x8] sm:$0xff] %v1377_v35  ;;  %v1333_v25 = vmul.f32 %v1664_v32, %v2230_v31  ;;  %v1346_v49 = vadd.f32 %v1338_v17, %v1269_v45  ;;  %v1257_v33 = vmul.f32 %v1666_v55, %v2246_v29 }
 0x17d   : > { %v1197_v42 = vadd.f32 %v1189_v15, %v1120_v41  ;;  %v1263_v16 = vmul.f32 %v1255_v61, %v2455_v46  ;;  %v1340_v11 = vmul.f32 %v1332_v38, %v2456_v22  ;;  %v1347_v60 = vadd.f32 %v1339_v44, %v1270_v28 }
 0x17e   : > { %v1264_v37 = vmul.f32 %v1256_v53, %v2457_v62  ;;  %v1341_v26 = vmul.f32 %v1333_v25, %v2458_v52  ;;  %v1378_v34 = vadd.f32 %v1364_v14, %v1346_v49  ;;  %v1265_v27 = vmul.f32 %v1257_v33, %v2459_v7 }
 0x17f   : > { %v1334_v31 = vmul.f32 %v1666_v55, %v2268_v51  ;;  %v1271_v32 = vadd.f32 %v1263_v16, %v1194_v13  ;;  %v1379_v3 = vadd.f32 %v1364_v14, %v1347_v60  ;;  %v1258_v29 = vmul.f32 %v1668_v0, %v2275_v48  ;;  %v2461_v51 = vld [vmem:[#allocation23_spill] sm:$0xff]  ;;  %v2462_v13 = vld [vmem:[#allocation24_spill] sm:$0xff]  ;;  %v1374_v24 = vpop.permute.xlu1 %1373 }
 0x180   : > { %v1272_v39 = vadd.f32 %v1264_v37, %v1195_v63  ;;  %1386 = vst [vmem:[%s2328_s10 + $0x10] sm:$0xff] %v1378_v34  ;;  %v1273_v36 = vadd.f32 %v1265_v27, %v1196_v23  ;;  %v1335_v12 = vmul.f32 %v1668_v0, %v2284_v8 }
 0x181   : > { %v1342_v43 = vmul.f32 %v1334_v31, %v2460_v4  ;;  %v1348_v1 = vadd.f32 %v1340_v11, %v1271_v32  ;;  %1387 = vst [vmem:[%s2328_s10 + $0x18] sm:$0xff] %v1379_v3  ;;  %v1266_v55 = vmul.f32 %v1258_v29, %v2461_v51 }
 0x182   : > { %v1349_v2 = vadd.f32 %v1341_v26, %v1272_v39  ;;  %v1343_v45 = vmul.f32 %v1335_v12, %v2462_v13 }
 0x183   : > { %v1350_v50 = vadd.f32 %v1342_v43, %v1273_v36  ;;  %v1274_v48 = vadd.f32 %v1266_v55, %v1197_v42  ;;  %v1380_v10 = vadd.f32 %v1369_v20, %v1348_v1 }
 0x184   : > { %v1381_v30 = vadd.f32 %v1369_v20, %v1349_v2 }
 0x185   : > { %v1382_v17 = vadd.f32 %v1374_v24, %v1350_v50  ;;  %1388 = vst [vmem:[%s2328_s10 + $0x20] sm:$0xff] %v1380_v10  ;;  %v1351_v8 = vadd.f32 %v1343_v45, %v1274_v48 }
 0x186   : > { %1389 = vst [vmem:[%s2328_s10 + $0x28] sm:$0xff] %v1381_v30 }
 0x187   : > { %1390 = vst [vmem:[%s2328_s10 + $0x30] sm:$0xff] %v1382_v17  ;;  %v1383_v0 = vadd.f32 %v1374_v24, %v1351_v8 }
 0x189   : > { %1391 = vst [vmem:[%s2328_s10 + $0x38] sm:$0xff] %v1383_v0 }
 0x18a   : > { %1682 = shalt.err (!%p1679_p3)
}
 0x18b   : > { %s1683_s20 = scalar_lea.hbm %s2358_s15, 1024  ;;  %s1687_s29 = scalar_lea.hbm %s2412_s6, 2048 }
 0x18c   : > { %p1684_p4 = scmp.ne.s32.totalorder %s2358_s15, %s1683_s20  ;;  %p1688_p9 = scmp.lt.u32.totalorder %s2358_s15, %s2412_s6 }
 0x18d   : > { %p1689_p10 = scmp.lt.u32.totalorder %s1687_s29, %s1683_s20  ;;  %p1691_p12 = scmp.lt.u32.totalorder %s1683_s20, %s2358_s15 }
 0x18e   : > { %p1685_p7 = pnand %p1684_p4, %p1812_p5 }
 0x18f   : > { %p1690_p11 = por %p1689_p10, %p1688_p9 }
 0x190   : > { %p1686_p8 = pneg %p1685_p7 }
 0x191   : > { %p1692_p13 = por %p1691_p12, %p1690_p11 }
 0x193   : > { %p1693_p0 = pnand %p1692_p13, %p1686_p8 }
 0x195   : > { %1696 = shalt.err (!%p1693_p0)
}
 0x196   : > { %s1737_s11 = smov 256   ;;  %s1738_s13 = smov 16  }
 0x197   : > { %1533 = dma.vmem_to_hbm [thread:$0]  (%p1812_p5), %s2360_s12, 1024, %s2358_s15, %s2365_s25, %s1737_s11, %s1737_s11, %s1738_s13  }
 0x198 PF: > { %p1539_p1 = scmp.ge.s32.totalorder %s1731_s24, 2  ;;  %s1421_s14 = sand.u32 1, %s1719_s21  }
 0x199   : > { %s1422_s16 = scalar_lea.sflag [#allocation3], %s1421_s14 }
 0x19a   : > { %p1536_p2 = pnand %p1539_p1, %p1816_p6 }
 0x19c   : > { %1714 = dma.done.wait (!%p1536_p2), %s1422_s16, 1024  }
 0x19d   : > { %1716 = vsyncadd (!%p1536_p2), %s1422_s16, 4294966272  ;;  %p16_p3 = scmp.ge.s32.totalorder %s1799_s27, 4   ;;  %s2463_s21 = smov %s1723_s22 }
 0x19e   : > { %s2464_s22 = smov %s1727_s23  ;;  %s2465_s23 = smov %s1810_s30 }
 0x19f   : > { %s2466_s24 = smov %s1799_s27  ;;  %18 = sbr.rel (!%p16_p3) target bundleno = 3 (0x3), region = 82 }
 0x1a6   :  { %1427 = vsyncpa [#allocation3], 1 }
 0x1a7   :  { %1429 = vsyncpa [#allocation3 + $0x1], 1 }

</bundles_post_ra>
